<compile_context>
chip_gen: v7x
topology: tpu7x:2x2x1
jax: 0.10.0
libtpu: 0.0.40
codegen_flags: <defaults>
</compile_context>

<pallas_src>
import numpy as np

import jax
import jax.numpy as jnp
from jax.experimental import pallas as pl
from jax.experimental.pallas import tpu as pltpu

BINARY_KEYS = ['forward', 'back', 'left', 'right', 'inventory', 'sprint', 'sneak',
               'jump', 'attack', 'use', 'hotbar_1', 'hotbar_2', 'hotbar_3',
               'hotbar_4', 'hotbar_5', 'hotbar_6', 'hotbar_7', 'hotbar_8', 'hotbar_9']

K_BIN = len(BINARY_KEYS)       # 19
K_FUSED = 2 + K_BIN + 1        # 22 = camera(2) + binaries(19) + constant-1 bias column


def _action_embed_kernel(a_ref, w_ref, o_ref):
    # a_ref: (tile_n, 22)    operands  [camera | binary actions | 1]
    # w_ref: (22, tile_h)    fused     [W_cam^T ; Delta ; b_cam + sum_k emb_k[0]]
    # o_ref: (tile_n, tile_h) output (bf16 or f32); f32 MXU accumulation.
    o_ref[...] = jnp.dot(a_ref[...], w_ref[...],
                         preferred_element_type=jnp.float32).astype(o_ref.dtype)


def _round_up(x, m):
    return ((x + m - 1) // m) * m


def _choose_tiles(N, H_pad, out_bytes, tile_n_req):
    # H tiling: keep one lane-dense slab (full-width unmasked stores) unless H
    # is very large, in which case add a second grid axis over H.
    tile_h = H_pad if H_pad <= 4096 else 2048

    # Row tile from a VMEM budget on the double-buffered OUTPUT block (the
    # dominant consumer): <= ~16 MiB keeps v7x (64 MiB phys / 32 MiB scoped),
    # v6e and v5e all comfortable while preserving double-buffering.
    out_block_budget = 16 * 1024 * 1024
    auto = out_block_budget // (2 * tile_h * out_bytes)
    auto = max(256, min(4096, auto))

    if tile_n_req is not None:
        tile_n = min(int(tile_n_req), auto)
    else:
        tile_n = auto
        # Ensure >= ~4 row-grid steps when N is big enough: lets the
        # "parallel" row axis split across v7x's 2 TCs and keeps per-TC
        # prefetch/writeback overlap alive.
        if N >= 1024:
            tile_n = min(tile_n, max(256, _round_up(pl.cdiv(N, 4), 8)))

    tile_n = min(tile_n, _round_up(N, 8))
    tile_n = max(8, (tile_n // 8) * 8)
    return tile_n, tile_h


def action_embedding_forward(action, params, *,
                             out_dtype=jnp.bfloat16,
                             operand_dtype=jnp.bfloat16,
                             tile_n=None):
    """action: dict with 'camera' (B,T,2) float and each binary key (B,T) int32.
    params:  dict with 'w_cam' (H,2), 'b_cam' (H,), 'emb' dict key->(2,H).

    Defaults use bf16 operands/output (fast path).  Pass
    out_dtype=operand_dtype=jnp.float32 for a numerically-exact path
    (matches the PyTorch module to ~1e-5)."""
    op_dt = np.dtype(operand_dtype)
    out_dt = np.dtype(out_dtype)

    cam = action['camera'].astype(jnp.float32)          # matches .float() in torch
    B, T, _ = cam.shape
    N = B * T
    H = params['w_cam'].shape[0]
    H_pad = _round_up(H, 128)

    # ---- fused activation matrix (N, 22): [camera | binaries | 1] ----------
    # Binary 0/1 columns and the constant-1 bias column are exact in bf16.
    cam2d = cam.reshape(N, 2).astype(op_dt)
    bins = jnp.stack(
        [action[key.replace('_', '.')].reshape(N) for key in BINARY_KEYS],
        axis=1,
    ).astype(op_dt)                                                     # (N, 19)
    ones = jnp.ones((N, 1), op_dt)                                      # bias col
    a_fused = jnp.concatenate([cam2d, bins, ones], axis=1)              # (N, 22)

    # ---- fused weights (22, H_pad): [W_cam^T ; emb1-emb0 ; bias row] --------
    wc_t = params['w_cam'].T.astype(jnp.float32)                        # (2, H)
    emb_stack = jnp.stack([params['emb'][k] for k in BINARY_KEYS],
                          axis=0).astype(jnp.float32)                   # (19,2,H)
    delta = emb_stack[:, 1, :] - emb_stack[:, 0, :]                     # (19, H)
    bias = (params['b_cam'].astype(jnp.float32)
            + jnp.sum(emb_stack[:, 0, :], axis=0)).reshape(1, H)        # (1, H)
    w_fused = jnp.concatenate([wc_t, delta, bias], axis=0)              # (22, H)
    if H_pad != H:
        w_fused = jnp.pad(w_fused, ((0, 0), (0, H_pad - H)))
    w_fused = w_fused.astype(op_dt)

    # ---- tiling / VMEM budget -----------------------------------------------
    in_bytes = op_dt.itemsize
    out_bytes = out_dt.itemsize
    tn, th = _choose_tiles(N, H_pad, out_bytes, tile_n)
    grid = (pl.cdiv(N, tn), pl.cdiv(H_pad, th))

    # Double-buffered A / W / OUT blocks + 50% headroom.
    block_bytes = 2 * (tn * K_FUSED * in_bytes
                       + K_FUSED * th * in_bytes
                       + tn * th * out_bytes)
    vmem_limit = int(min(128 * 1024 * 1024,
                         max(8 * 1024 * 1024, block_bytes * 3 // 2)))

    cost = pl.CostEstimate(
        flops=2 * N * K_FUSED * H_pad,
        transcendentals=0,
        bytes_accessed=(N * K_FUSED * in_bytes          # A stream
                        + K_FUSED * H_pad * in_bytes    # resident weights
                        + N * H_pad * out_bytes),       # dominant: output store
    )

    out = pl.pallas_call(
        _action_embed_kernel,
        out_shape=jax.ShapeDtypeStruct((N, H_pad), out_dt),
        grid_spec=pltpu.PrefetchScalarGridSpec(
            num_scalar_prefetch=0,
            grid=grid,
            in_specs=[
                pl.BlockSpec((tn, K_FUSED), lambda i, j: (i, 0)),   # streamed rows
                pl.BlockSpec((K_FUSED, th), lambda i, j: (0, j)),   # (near-)resident weights
            ],
            out_specs=pl.BlockSpec((tn, th), lambda i, j: (i, j)),
        ),
        compiler_params=pltpu.CompilerParams(
            dimension_semantics=("parallel", "parallel"),           # v7x: 2 TCs
            vmem_limit_bytes=vmem_limit,
        ),
        cost_estimate=cost,
    )(a_fused, w_fused)

    if H_pad != H:
        out = out[:, :H]
    return out.reshape(B, T, H)


def reference_forward(action, params):
    """Pure-JAX reference mirroring the PyTorch module exactly."""
    cam = action['camera'].astype(jnp.float32)
    x = jnp.einsum('btc,hc->bth', cam, params['w_cam']) + params['b_cam']
    for key in BINARY_KEYS:
        idx = action[key.replace('_', '.')]
        x = x + params['emb'][key][idx]
    return x


def init_params(key, hiddim):
    k_w, k_b, k_e = jax.random.split(key, 3)
    params = {
        'w_cam': jax.random.normal(k_w, (hiddim, 2), jnp.float32) * 0.1,
        'b_cam': jax.random.normal(k_b, (hiddim,), jnp.float32) * 0.1,
        'emb': {},
    }
    ekeys = jax.random.split(k_e, len(BINARY_KEYS))
    for k, name in zip(ekeys, BINARY_KEYS):
        params['emb'][name] = jax.random.normal(k, (2, hiddim), jnp.float32) * 0.1
    return params


def make_action(key, B, T):
    k_cam, k_act = jax.random.split(key, 2)
    action = {'camera': jax.random.normal(k_cam, (B, T, 2), jnp.float32)}
    akeys = jax.random.split(k_act, len(BINARY_KEYS))
    for k, name in zip(akeys, BINARY_KEYS):
        action[name.replace('_', '.')] = jax.random.bernoulli(k, 0.5, (B, T)).astype(jnp.int32)
    return action


if __name__ == "__main__":
    root = jax.random.PRNGKey(0)
    k_param, k_param2, k_a1, k_a2 = jax.random.split(root, 4)

    # Small shapes consistent with the module.
    B, T, H = 2, 8, 32
    params = init_params(k_param, H)
    action = make_action(k_a1, B, T)
    ref = reference_forward(action, params)

    # Exact path (f32 operands + f32 output), tight tolerance vs reference.
    out_f32 = jax.block_until_ready(
        action_embedding_forward(action, params,
                                 out_dtype=jnp.float32,
                                 operand_dtype=jnp.float32))
    assert out_f32.shape == (B, T, H)
    assert jnp.allclose(out_f32, ref, atol=1e-5, rtol=1e-5), "f32 mismatch vs reference"

    # Default fast path (bf16 operands + bf16 output), relaxed tolerance.
    out_bf16 = jax.block_until_ready(action_embedding_forward(action, params))
    assert out_bf16.dtype == jnp.bfloat16
    assert jnp.allclose(out_bf16.astype(jnp.float32), ref, atol=2e-2, rtol=2e-2), \
        "bf16 mismatch vs reference"

    # Partial last row-block (N % tile_n != 0) + larger H to exercise masked
    # writeback and the H/dtype-aware tile sizing.
    B2, T2, H2 = 3, 50, 256   # N = 150, tile_n = 64 -> 3 blocks, last partial
    params2 = init_params(k_param2, H2)
    action2 = make_action(k_a2, B2, T2)
    out2 = jax.block_until_ready(
        action_embedding_forward(action2, params2,
                                 out_dtype=jnp.float32,
                                 operand_dtype=jnp.float32,
                                 tile_n=64))
    ref2 = reference_forward(action2, params2)
    assert out2.shape == (B2, T2, H2)
    assert jnp.allclose(out2, ref2, atol=1e-5, rtol=1e-5), "partial-block mismatch"

    print("KERNEL_OK")
</pallas_src>

<mosaic_0001>
module attributes {stable_mosaic.version = 11 : i64} {
  func.func @_action_embed_kernel(%arg0: i32, %arg1: i32, %arg2: memref<16x22xf32, #tpu.memory_space<vmem>>, %arg3: memref<22x128xf32, #tpu.memory_space<vmem>>, %arg4: memref<16x128xf32, #tpu.memory_space<vmem>>) attributes {dimension_semantics = [#tpu.dimension_semantics<parallel>, #tpu.dimension_semantics<parallel>], iteration_bounds = array<i64: 1, 1>, scalar_prefetch = 0 : i64, scratch_operands = 0 : i64, tpu.core_type = #tpu.core_type<tc>, window_params = [{transform_indices = @transform_0, window_bounds = array<i64: 16, 22>}, {transform_indices = @transform_1, window_bounds = array<i64: 22, 128>}, {transform_indices = @transform_2, window_bounds = array<i64: 16, 128>}]} {
    %c0 = arith.constant 0 : index
    %c0_0 = arith.constant 0 : index
    %0 = vector.load %arg2[%c0, %c0_0] : memref<16x22xf32, #tpu.memory_space<vmem>>, vector<16x22xf32>
    %c0_1 = arith.constant 0 : index
    %c0_2 = arith.constant 0 : index
    %1 = vector.load %arg3[%c0_1, %c0_2] : memref<22x128xf32, #tpu.memory_space<vmem>>, vector<22x128xf32>
    %cst = arith.constant dense<0.000000e+00> : vector<16x128xf32>
    %2 = tpu.matmul %0, %1, %cst {dimension_numbers = #tpu.dot_dimension_numbers<[1], [0], [0], [1], [0, 0, 1, 1], [], []>} : vector<16x22xf32>, vector<22x128xf32>, vector<16x128xf32> -> vector<16x128xf32>
    %c0_3 = arith.constant 0 : index
    %c0_4 = arith.constant 0 : index
    %3 = vector.load %arg4[%c0_3, %c0_4] : memref<16x128xf32, #tpu.memory_space<vmem>>, vector<16x128xf32>
    tpu.vector_store %arg4[%c0_3, %c0_4], %2 {strides = array<i32>} : memref<16x128xf32, #tpu.memory_space<vmem>>, vector<16x128xf32>,
    return
  }
  func.func @transform_0(%arg0: i32, %arg1: i32) -> (i32, i32) {
    %c0_i32 = arith.constant 0 : i32
    %c0_i32_0 = arith.constant 0 : i32
    return %arg0, %c0_i32 : i32, i32
  }
  func.func @transform_1(%arg0: i32, %arg1: i32) -> (i32, i32) {
    %c0_i32 = arith.constant 0 : i32
    %c0_i32_0 = arith.constant 0 : i32
    return %c0_i32, %arg1 : i32, i32
  }
  func.func @transform_2(%arg0: i32, %arg1: i32) -> (i32, i32) {
    %c0_i32 = arith.constant 0 : i32
    return %arg0, %arg1 : i32, i32
  }
}

</mosaic_0001>

<bundles_post_ra>
// kernel: tpu_custom_call.1
= control target key start
LH: loop header
LB: loop body
LE: loop exit
PB: predicated region body
PF: predicated region fallthrough
CT: control target
= control target key end

     0   :  { %7 = vsyncpa [#allocation3], 0  ;;  %s314_s0 = inlined_call_operand.hbm [shape: f32[16,22], index: 0, kind: input, shape index: {}]   ;;  %s315_s1 = inlined_call_operand.hbm [shape: f32[22,128], index: 1, kind: input, shape index: {}]   ;;  %s316_s2 = inlined_call_operand.hbm [shape: f32[16,128], index: 2, kind: output, shape index: {}]  }
   0x1   :  { %8 = vsyncpa [#allocation6], 0 }
   0x2   :  { %9 = vsyncpa [#allocation4], 0  ;;  %s249_s9 = smov [#allocation2]   ;;  %s177_s13 = scalar_lea.hbm %s314_s0, 256 }
   0x3   :  { %s15_s10 = sshll.u32 %s249_s9, 4  ;;  %p178_p0 = scmp.ne.s32.totalorder %s314_s0, %s177_s13  ;;  %s16_s10 = int_to_ptr.vmem [resolvable:$true] %s15_s10 }
   0x4   :  { %p181_p1 = scmp.lt.u32.totalorder %s177_s13, %s314_s0 }
   0x6   :  { %p183_p2 = pnand %p181_p1, %p178_p0 }
   0x8   :  { %186 = shalt.err (!%p183_p2)
}
   0x9   :  { %s187_s18 = scalar_lea.vmem %s16_s10, 256  ;;  %p192_p4 = scmp.lt.s32.totalorder %s16_s10, %s16_s10 }
   0xa   :  { %p188_p3 = scmp.ne.s32.totalorder %s16_s10, %s187_s18  ;;  %p193_p5 = scmp.lt.s32.totalorder %s187_s18, %s187_s18 }
   0xc   :  { %p194_p6 = por %p193_p5, %p192_p4 }
   0xe   :  { %p195_p7 = pnand %p194_p6, %p188_p3 }
  0x10   :  { %198 = shalt.err (!%p195_p7)
}
  0x11   :  { %s250_s19 = smov 128   ;;  %s251_s20 = smov 8  }
  0x12   :  { %21 = dma.hbm_to_vmem [thread:$0]  %s314_s0, 256, %s16_s10, [#allocation3], %s250_s19, %s250_s19, %s251_s20  }
  0x13   :  { %s252_s23 = smov [#allocation5]   ;;  %s199_s27 = scalar_lea.hbm %s315_s1, 384 }
  0x14   :  { %s27_s24 = sshll.u32 %s252_s23, 4  ;;  %p200_p8 = scmp.ne.s32.totalorder %s315_s1, %s199_s27  ;;  %s28_s24 = int_to_ptr.vmem [resolvable:$true] %s27_s24 }
  0x15   :  { %p203_p9 = scmp.lt.u32.totalorder %s199_s27, %s315_s1 }
  0x17   :  { %p205_p10 = pnand %p203_p9, %p200_p8 }
  0x19   :  { %208 = shalt.err (!%p205_p10)
}
  0x1a   :  { %s209_s4 = scalar_lea.vmem %s28_s24, 384  ;;  %p214_p12 = scmp.lt.s32.totalorder %s28_s24, %s28_s24 }
  0x1b   :  { %p210_p11 = scmp.ne.s32.totalorder %s28_s24, %s209_s4  ;;  %p215_p13 = scmp.lt.s32.totalorder %s209_s4, %s209_s4 }
  0x1d   :  { %p216_p0 = por %p215_p13, %p214_p12 }
  0x1f   :  { %p217_p1 = pnand %p216_p0, %p210_p11 }
  0x21   :  { %220 = shalt.err (!%p217_p1)
}
  0x22   :  { %33 = dma.hbm_to_vmem [thread:$0]  %s315_s1, 384, %s28_s24, [#allocation6], %s250_s19, %s250_s19, %s251_s20  }
  0x23   :  { %243 = dma.done.wait [#allocation3], 256  }
  0x24   :  { %244 = vsyncadd [#allocation3], 4294967040 }
  0x25   :  { %245 = dma.done.wait [#allocation6], 384  }
  0x26   :  { %246 = vsyncadd [#allocation6], 4294966912  ;;  %vm45_vm0 = vcmask 179200   ;;  %v42_v0 = vld [vmem:[#allocation5] sm:$0xff]  ;;  %v43_v1 = vld [vmem:[#allocation5 + $0x8] sm:$0xff]  ;;  %vm52_vm1 = vcmask 1045504  }
  0x27   :  { %v168_v2 = vpack.c.bf16 %v43_v1, %v42_v0  ;;  %v40_v3 = vld [vmem:[#allocation2] sm:$0xff]  ;;  %v41_v5 = vld [vmem:[#allocation2 + $0x8] sm:$0xff]  ;;  %s253_s6 = smov [#allocation7]  }
  0x28   :  { %v44_v4 = vld [vmem:[#allocation5 + $0x10] sm:$0x3f]  ;;  %165 = vmatprep.mubr.msk.f32.mxu0 %vm45_vm0, %v40_v3  ;;  %s138_s1 = sshll.u32 %s253_s6, 4  ;;  %s139_s1 = int_to_ptr.vmem [resolvable:$true] %s138_s1 }
  0x29   :  { %169 = vmatprep.subr.bf16.mxu0 %v168_v2  ;;  %s221_s7 = scalar_lea.vmem %s139_s1, 256  ;;  %p226_p3 = scmp.lt.s32.totalorder %s139_s1, %s139_s1 }
  0x2a   :  { %171 = vmatpush3.bf16.msra.mxu0 %v168_v2  ;;  %p222_p2 = scmp.ne.s32.totalorder %s139_s1, %s221_s7  ;;  %p227_p4 = scmp.lt.s32.totalorder %s221_s7, %s221_s7 }
  0x2b   :  { %163 = vmatprep.subr.msk.mxu0 %vm52_vm1, %v44_v4 }
  0x2c   :  { %p228_p5 = por %p227_p4, %p226_p3 }
  0x2e   :  { %164 = vmatpush3.msk.msra.mxu0 %vm52_vm1, %v44_v4  ;;  %p229_p6 = pnand %p228_p5, %p222_p2 }
  0x2f   :  { %166 = vmatmul.mubr.msk.f32.vlgmr.msra.gmra.mrb[0].mxu0 %vm45_vm0, %v41_v5 }
 0x102   :  { %v167_v6 = vpop.f32.mrb[0].mxu0 }
 0x103   :  { %132 = vst [vmem:[#allocation7 + $0x8] sm:$0xff] %v167_v6  ;;  %v122_v7 = vpop.f32.mrb[1].mxu0 }
 0x104   :  { %131 = vst [vmem:[#allocation7] sm:$0xff] %v122_v7 }
 0x105   :  { %232 = shalt.err (!%p229_p6)
}
 0x106   :  { %s233_s10 = scalar_lea.hbm %s316_s2, 256 }
 0x107   :  { %p234_p7 = scmp.ne.s32.totalorder %s316_s2, %s233_s10  ;;  %p237_p8 = scmp.lt.u32.totalorder %s233_s10, %s316_s2 }
 0x109   :  { %p239_p9 = pnand %p237_p8, %p234_p7 }
 0x10b   :  { %242 = shalt.err (!%p239_p9)
}
 0x10c   :  { %144 = dma.vmem_to_hbm [thread:$0]  %s139_s1, 256, %s316_s2, [#allocation4], %s250_s19, %s250_s19, %s251_s20  }
 0x10d   :  { %247 = dma.done.wait [#allocation4], 256  }
 0x10e   :  { %248 = vsyncadd [#allocation4], 4294967040 }
 0x10f   :  { %148 = vsyncpa [#allocation3], 1 }
 0x110   :  { %149 = vsyncpa [#allocation6], 1 }
 0x111   :  { %150 = vsyncpa [#allocation4], 1 }

</bundles_post_ra>
